<compile_context>
chip_gen: v6e
topology: v6e:2x2x1
jax: 0.10.0
libtpu: 0.0.40
codegen_flags: <defaults>
</compile_context>

<pallas_src>
import functools

import jax
import jax.numpy as jnp
from jax.experimental import pallas as pl
from jax.experimental.pallas import tpu as pltpu


# ---------------------------------------------------------------------------
# Kernel: copy each static channel-chunk slice of the input block into its
# output block.  Pure VMEM->VMEM vreg copies; all HBM traffic is the
# BlockSpec-generated DMAs.
# ---------------------------------------------------------------------------
def _split_copy_kernel(x_ref, *o_refs):
    # x_ref:     (tn, num_chunks, tr, Lr)  or  (tn, num_chunks, tl)
    # o_refs[k]: (tn, tr, Lr)              or  (tn, tl)
    for k, o_ref in enumerate(o_refs):
        if len(x_ref.shape) == 4:
            o_ref[...] = x_ref[:, k, :, :]
        else:
            o_ref[...] = x_ref[:, k, :]


# ---------------------------------------------------------------------------
# Layout / tiling heuristics (all static Python, run at trace time)
# ---------------------------------------------------------------------------
def _pick_lane_split(L, max_lr=8192):
    """Factor L = R * Lr with Lr % 128 == 0, maximizing vreg fill.

    Fill of a (R, Lr) slab is L / (ceil(R/8) * (Lr/128) * 1024); it is 100%
    when R % 8 == 0.  Ties prefer larger R (more sublane rows to tile over).
    Returns (R, Lr) or None if L has no multiple-of-128 divisor.
    """
    if L % 128 != 0:
        return None
    best = None
    for lr in range(128, min(L, max_lr) + 1, 128):
        if L % lr != 0:
            continue
        r = L // lr
        vregs = (-(-r // 8)) * (lr // 128)
        key = (vregs, -r)
        if best is None or key < best[0]:
            best = (key, r, lr)
    return best[1], best[2]


def _choose_tiles_4d(N, R, unit_bytes, target_bytes, min_steps, floor_bytes):
    """Block sizes (tn, tr) for the (N, num_chunks, R, Lr) layout.

    unit_bytes = input-block bytes for tn == tr == 1.  tr is the sublane dim
    of every block, so it must be a multiple of 8 or the full extent R.
    """
    cdiv = lambda a, b: -(-a // b)

    def fix_tr(t):
        t = max(1, min(t, R))
        if t == R or t % 8 == 0:
            return t
        if t > 8:
            return (t // 8) * 8
        return 8 if R >= 8 else R

    def blk(tn, tr):
        return tn * tr * unit_bytes

    tn, tr = N, R
    # 1) Fit the VMEM budget (true footprint ~= 4x the input block: input +
    #    outputs, double-buffered).  Shrink the outer batch tile first.
    while tn > 1 and blk(tn, tr) > target_bytes:
        tn = cdiv(tn, 2)
    while tr > 8 and blk(tn, tr) > target_bytes:
        tr = fix_tr(cdiv(tr, 2))

    # 2) Guarantee enough grid steps for DMA/compute overlap and v7x megacore
    #    sharding, but never shatter small problems below floor_bytes.
    def steps(a, b):
        return cdiv(N, a) * cdiv(R, b)

    while steps(tn, tr) < min_steps:
        new_tr = fix_tr(cdiv(tr, 2)) if tr > 8 else tr
        new_tn = cdiv(tn, 2) if tn > 1 else tn
        if new_tr != tr and blk(tn, new_tr) >= floor_bytes:
            tr = new_tr
        elif new_tn != tn and blk(new_tn, tr) >= floor_bytes:
            tn = new_tn
        else:
            break
    return tn, tr


def _choose_tiles_3d(N, L, num_chunks, dsize, target_bytes, min_steps,
                     floor_bytes):
    """Block sizes (tn, tl) for the (N, num_chunks, L) fallback layout.

    tn is the output sublane dim (multiple of 8 or full N); tl is a lane tile
    (multiple of 128, tail block masked) or the full extent when L <= 128.
    """
    cdiv = lambda a, b: -(-a // b)

    def fix_tn(t):
        t = max(1, min(t, N))
        if t == N or t % 8 == 0:
            return t
        if t > 8:
            return (t // 8) * 8
        return 8 if N >= 8 else N

    def blk(tn, tl):
        return tn * num_chunks * tl * dsize

    tl = L if L <= 128 else (L // 128) * 128
    tn = N
    while tl > 128 and blk(tn, tl) > target_bytes:
        tl = max(128, (cdiv(tl, 2) // 128) * 128)
    while tn > 8 and blk(tn, tl) > target_bytes:
        tn = fix_tn(cdiv(tn, 2))

    def steps(a, b):
        return cdiv(N, a) * cdiv(L, b)

    while steps(tn, tl) < min_steps:
        new_tl = max(128, (tl // 2 // 128) * 128) if tl > 128 else tl
        new_tn = fix_tn(cdiv(tn, 2)) if tn > 1 else tn
        if new_tl != tl and blk(tn, new_tl) >= floor_bytes:
            tl = new_tl
        elif new_tn != tn and blk(new_tn, tl) >= floor_bytes:
            tn = new_tn
        else:
            break
    return tn, tl


# ---------------------------------------------------------------------------
# Public wrapper (== Split.forward)
# ---------------------------------------------------------------------------
@functools.partial(jax.jit, static_argnums=(1, 2, 3))
def pallas_split(x, channels: int, num_chunks: int, dim: int):
    """Equivalent of Split.forward: returns a tuple of `num_chunks` arrays."""
    assert dim == 1, "this kernel implements the channel-dim (NCHW dim=1) split"
    N, C, H, W = x.shape
    assert C == channels
    # TODO(synk): torch.split allows a ragged last chunk when
    # channels % num_chunks != 0; this kernel implements the even-split case
    # (the common use of this block).
    assert channels % num_chunks == 0
    csize = channels // num_chunks
    L = csize * H * W
    dsize = jnp.dtype(x.dtype).itemsize

    TARGET_BYTES = 4 << 20     # input block target (~16 MiB true footprint)
    MIN_STEPS = 8              # >= 8 grid steps when the tensor is big enough
    FLOOR_BYTES = 512 << 10    # never shrink input blocks below this

    split = _pick_lane_split(L)
    if split is not None:
        # Dense path: (N, num_chunks, R, Lr) view; every block has Lr (mult of
        # 128) on lanes and tr (mult of 8 when possible) on sublanes.
        R, Lr = split
        x_view = x.reshape(N, num_chunks, R, Lr)
        tn, tr = _choose_tiles_4d(N, R, num_chunks * Lr * dsize,
                                  TARGET_BYTES, MIN_STEPS, FLOOR_BYTES)
        grid = (pl.cdiv(N, tn), pl.cdiv(R, tr))
        in_specs = [pl.BlockSpec((tn, num_chunks, tr, Lr),
                                 lambda n, r: (n, 0, r, 0))]
        out_specs = tuple(pl.BlockSpec((tn, tr, Lr), lambda n, r: (n, r, 0))
                          for _ in range(num_chunks))
        out_shape = tuple(jax.ShapeDtypeStruct((N, R, Lr), x.dtype)
                          for _ in range(num_chunks))
    else:
        # Fallback (csize*H*W not a multiple of 128): lane-tile L in 128
        # multiples with a masked tail block; outputs put N on the sublanes.
        x_view = x.reshape(N, num_chunks, L)
        tn, tl = _choose_tiles_3d(N, L, num_chunks, dsize,
                                  TARGET_BYTES, MIN_STEPS, FLOOR_BYTES)
        grid = (pl.cdiv(N, tn), pl.cdiv(L, tl))
        in_specs = [pl.BlockSpec((tn, num_chunks, tl), lambda n, t: (n, 0, t))]
        out_specs = tuple(pl.BlockSpec((tn, tl), lambda n, t: (n, t))
                          for _ in range(num_chunks))
        out_shape = tuple(jax.ShapeDtypeStruct((N, L), x.dtype)
                          for _ in range(num_chunks))

    outs = pl.pallas_call(
        _split_copy_kernel,
        out_shape=out_shape,
        grid=grid,
        in_specs=in_specs,
        out_specs=out_specs,
        compiler_params=pltpu.CompilerParams(
            dimension_semantics=("parallel", "parallel"),
            vmem_limit_bytes=48 << 20,   # explicit: covers the ~16-20 MiB
                                         # footprint on v5e/v6e/v7x defaults
        ),
        cost_estimate=pl.CostEstimate(
            flops=0, transcendentals=0, bytes_accessed=2 * x.size * dsize),
    )(x_view)

    # Reshape each chunk back to NCHW (free metadata reshape of a contiguous
    # array under jit).
    return tuple(o.reshape(N, csize, H, W) for o in outs)


if __name__ == "__main__":
    # Module config: channels=4, num_chunks=2, dim=1 (NCHW channel split).
    channels, num_chunks, dim = 4, 2, 1

    key = jax.random.PRNGKey(0)
    x = jax.random.normal(key, (2, channels, 16, 16), dtype=jnp.float32)

    outs = pallas_split(x, channels, num_chunks, dim)
    outs = jax.block_until_ready(outs)

    # Reference check against plain-JAX split (== torch.split semantics).
    ref = jnp.split(x, num_chunks, axis=dim)
    assert len(outs) == num_chunks
    for o, r in zip(outs, ref):
        assert o.shape == r.shape and o.dtype == r.dtype
        assert jnp.array_equal(o, r)

    print("KERNEL_OK")
</pallas_src>

<mosaic_0001>
module attributes {stable_mosaic.version = 11 : i64} {
  func.func @_split_copy_kernel(%arg0: i32, %arg1: i32, %arg2: memref<2x2x4x128xf32, #tpu.memory_space<vmem>>, %arg3: memref<2x4x128xf32, #tpu.memory_space<vmem>>, %arg4: memref<2x4x128xf32, #tpu.memory_space<vmem>>) attributes {dimension_semantics = [#tpu.dimension_semantics<parallel>, #tpu.dimension_semantics<parallel>], iteration_bounds = array<i64: 1, 1>, scalar_prefetch = 0 : i64, scratch_operands = 0 : i64, tpu.core_type = #tpu.core_type<tc>, window_params = [{transform_indices = @transform_0, window_bounds = array<i64: 2, 2, 4, 128>}, {transform_indices = @transform_1, window_bounds = array<i64: 2, 4, 128>}, {transform_indices = @transform_2, window_bounds = array<i64: 2, 4, 128>}]} {
    %c0 = arith.constant 0 : index
    %c0_0 = arith.constant 0 : index
    %c0_1 = arith.constant 0 : index
    %c0_2 = arith.constant 0 : index
    %0 = vector.load %arg2[%c0, %c0_0, %c0_1, %c0_2] : memref<2x2x4x128xf32, #tpu.memory_space<vmem>>, vector<2x1x4x128xf32>
    %1 = vector.shape_cast %0 : vector<2x1x4x128xf32> to vector<2x4x128xf32>
    %c0_3 = arith.constant 0 : index
    %c0_4 = arith.constant 0 : index
    %c0_5 = arith.constant 0 : index
    %2 = vector.load %arg3[%c0_3, %c0_4, %c0_5] : memref<2x4x128xf32, #tpu.memory_space<vmem>>, vector<2x4x128xf32>
    tpu.vector_store %arg3[%c0_3, %c0_4, %c0_5], %1 {strides = array<i32>} : memref<2x4x128xf32, #tpu.memory_space<vmem>>, vector<2x4x128xf32>,
    %c0_6 = arith.constant 0 : index
    %c1 = arith.constant 1 : index
    %c0_7 = arith.constant 0 : index
    %c0_8 = arith.constant 0 : index
    %3 = vector.load %arg2[%c0_6, %c1, %c0_7, %c0_8] : memref<2x2x4x128xf32, #tpu.memory_space<vmem>>, vector<2x1x4x128xf32>
    %4 = vector.shape_cast %3 : vector<2x1x4x128xf32> to vector<2x4x128xf32>
    %c0_9 = arith.constant 0 : index
    %c0_10 = arith.constant 0 : index
    %c0_11 = arith.constant 0 : index
    %5 = vector.load %arg4[%c0_9, %c0_10, %c0_11] : memref<2x4x128xf32, #tpu.memory_space<vmem>>, vector<2x4x128xf32>
    tpu.vector_store %arg4[%c0_9, %c0_10, %c0_11], %4 {strides = array<i32>} : memref<2x4x128xf32, #tpu.memory_space<vmem>>, vector<2x4x128xf32>,
    return
  }
  func.func @transform_0(%arg0: i32, %arg1: i32) -> (i32, i32, i32, i32) {
    %c0_i32 = arith.constant 0 : i32
    %c0_i32_0 = arith.constant 0 : i32
    %c0_i32_1 = arith.constant 0 : i32
    return %arg0, %c0_i32, %arg1, %c0_i32_0 : i32, i32, i32, i32
  }
  func.func @transform_1(%arg0: i32, %arg1: i32) -> (i32, i32, i32) {
    %c0_i32 = arith.constant 0 : i32
    %c0_i32_0 = arith.constant 0 : i32
    return %arg0, %arg1, %c0_i32 : i32, i32, i32
  }
  func.func @transform_2(%arg0: i32, %arg1: i32) -> (i32, i32, i32) {
    %c0_i32 = arith.constant 0 : i32
    %c0_i32_0 = arith.constant 0 : i32
    return %arg0, %arg1, %c0_i32 : i32, i32, i32
  }
}

</mosaic_0001>

<bundles_post_ra>
// kernel: pallas_split.1
= control target key start
LH: loop header
LB: loop body
LE: loop exit
PB: predicated region body
PF: predicated region fallthrough
CT: control target
= control target key end

     0   :  { %s68_s0 = inlined_call_operand.vmem [shape: f32[2,2,4,128], index: 0, kind: input, shape index: {}]   ;;  %s69_s1 = inlined_call_operand.vmem [shape: f32[2,4,128], index: 1, kind: output, shape index: {0}]   ;;  %s70_s2 = inlined_call_operand.vmem [shape: f32[2,4,128], index: 2, kind: output, shape index: {1}]  }
   0x1   :  { %v10_v0 = vld [vmem:[%s68_s0] sm:$0xf]  ;;  %v11_v1 = vld [vmem:[%s68_s0 + $0x8] sm:$0xf]  ;;  %v27_v2 = vld [vmem:[%s68_s0 + $0x4] sm:$0xf] }
   0x2   :  { %12 = vst [vmem:[%s69_s1] sm:$0xf] %v10_v0  ;;  %13 = vst [vmem:[%s69_s1 + $0x4] sm:$0xf] %v11_v1  ;;  %v28_v3 = vld [vmem:[%s68_s0 + $0xc] sm:$0xf] }
   0x3   :  { %17 = vst [vmem:[%s70_s2] sm:$0xf] %v27_v2  ;;  %18 = vst [vmem:[%s70_s2 + $0x4] sm:$0xf] %v28_v3 }

</bundles_post_ra>
